<compile_context>
chip_gen: v6e
topology: v6e:2x2x1
jax: 0.10.0
libtpu: 0.0.40
codegen_flags: <defaults>
</compile_context>

<pallas_src>
import functools

import jax
import jax.numpy as jnp
import numpy as np
from jax.experimental import pallas as pl
from jax.experimental.pallas import tpu as pltpu


def _conv_bn_lrelu_kernel(ph_ref, w_ref, b_ref, o_ref, *, wp, ho, tco):
    # ph_ref: (1, 4, C_in, Hp*Wp) bf16 parity phases of the padded input
    #         phase p = 2*row_odd + col_odd, flattened (Hp, Wp) spatial.
    # w_ref : (9, tco, C_in) bf16 BN-folded weights, tap index t = kh*3 + kw
    # b_ref : (tco, 1) f32 BN-folded bias
    # o_ref : (1, tco, Ho*Wp) output block (lane-dense over flattened spatial)
    mp = ho * wp
    acc = jnp.zeros((tco, mp), dtype=jnp.float32)
    # Output pixel (i, j) needs padded-input (2i+kh, 2j+kw).  With the parity
    # split, that is phase (kh&1, kw&1) at (i + [kh==2], j + [kw==2]), i.e. a
    # static flat offset of dh*Wp + dw — no strided or gathered access needed.
    for kh in range(3):
        row_odd = 1 if kh == 1 else 0
        dh = 1 if kh == 2 else 0
        for kw in range(3):
            col_odd = 1 if kw == 1 else 0
            dw = 1 if kw == 2 else 0
            p = 2 * row_odd + col_odd
            off = dh * wp + dw
            rhs = ph_ref[0, p, :, off:off + mp]            # (C_in, Mp) bf16
            acc = acc + jnp.dot(w_ref[kh * 3 + kw], rhs,   # bf16 MXU, f32 acc
                                preferred_element_type=jnp.float32)
    y = acc + b_ref[...]                                   # (tco, 1) broadcast
    y = jnp.where(y > 0, y, 0.1 * y)                       # LeakyReLU(0.1)
    o_ref[0] = y.astype(o_ref.dtype)


def downsample_layer(x, w, gamma, beta, running_mean, running_var, eps=1e-5):
    """x: (N, C_in, H, W) -> (N, C_out, Ho, Wo), Ho = ceil(H/2), Wo = ceil(W/2)."""
    N, C_in, H, W = x.shape
    C_out = w.shape[0]
    Ho = (H + 2 - 3) // 2 + 1
    Wo = (W + 2 - 3) // 2 + 1
    Hp, Wp = Ho + 2, Wo + 1          # phase dims (+ slack so every tap slice is in range)
    Mp = Ho * Wp                     # flattened spatial per image (col j==Wo is junk)

    # ---- Fold BatchNorm (inference) into conv weights / per-channel bias.
    scale = gamma / jnp.sqrt(running_var + eps)                       # (C_out,)
    bias = (beta - running_mean * scale).astype(jnp.float32).reshape(C_out, 1)
    w_eff = (w * scale[:, None, None, None]).astype(jnp.float32)      # (C_out, C_in, 3, 3)
    # (C_out, C_in, 3, 3) -> (9, C_out, C_in), bf16 for the MXU.
    w_taps = jnp.transpose(w_eff, (2, 3, 0, 1)).reshape(9, C_out, C_in)
    w_taps = w_taps.astype(jnp.bfloat16)

    # ---- bf16 space-to-depth phase split of the zero-padded input (~1x volume).
    # Extra bottom/right zeros give uniform (Hp, Wp) phases and also handle odd H/W.
    pad_b = 2 * Hp - H - 1
    pad_r = 2 * Wp - W - 1
    xpad = jnp.pad(x, ((0, 0), (0, 0), (1, pad_b), (1, pad_r))).astype(jnp.bfloat16)
    phases = jnp.stack(
        [xpad[:, :, 0::2, 0::2], xpad[:, :, 0::2, 1::2],
         xpad[:, :, 1::2, 0::2], xpad[:, :, 1::2, 1::2]], axis=1,
    ).reshape(N, 4, C_in, Hp * Wp)                                    # (N, 4, C_in, Hp*Wp)

    # ---- C_out tiling keeps output/accumulator blocks bounded for big layers.
    if C_out % 256 == 0:
        tco = 256
    elif C_out % 128 == 0:
        tco = 128
    else:
        tco = C_out                  # small layers: one block (equals full dim)
    grid = (N, C_out // tco)         # both axes "parallel"; N>=2 keeps v7x's 2 TCs busy

    # ---- Explicit VMEM budget (double-buffered in/out blocks + weights + acc).
    in_block = 4 * C_in * Hp * Wp * 2
    w_bytes = 9 * C_out * C_in * 2 + C_out * 4
    out_block = tco * Mp * 4
    acc_bytes = tco * Mp * 4
    need = 2 * in_block + 2 * w_bytes + 2 * out_block + acc_bytes + (1 << 20)
    # Clamp well below v7x's 64 MiB physical VMEM; larger layers should add a
    # C_in ("arbitrary") grid axis rather than raise this further.
    vmem_limit = max(32 * 1024 * 1024, min(int(1.3 * need), 48 * 1024 * 1024))

    kernel = functools.partial(_conv_bn_lrelu_kernel, wp=Wp, ho=Ho, tco=tco)

    flops = int(2 * N * C_out * 9 * C_in * Mp)
    bytes_accessed = int(phases.size * 2 + w_taps.size * 2 + bias.size * 4
                         + N * C_out * Mp * 4)

    out_flat = pl.pallas_call(
        kernel,
        out_shape=jax.ShapeDtypeStruct((N, C_out, Mp), x.dtype),
        grid_spec=pltpu.PrefetchScalarGridSpec(
            num_scalar_prefetch=0,
            grid=grid,
            in_specs=[
                pl.BlockSpec((1, 4, C_in, Hp * Wp), lambda n, co: (n, 0, 0, 0)),
                pl.BlockSpec((9, tco, C_in), lambda n, co: (0, co, 0)),
                pl.BlockSpec((tco, 1), lambda n, co: (co, 0)),
            ],
            out_specs=pl.BlockSpec((1, tco, Mp), lambda n, co: (n, co, 0)),
        ),
        compiler_params=pltpu.CompilerParams(
            dimension_semantics=("parallel", "parallel"),
            vmem_limit_bytes=vmem_limit,
        ),
        cost_estimate=pl.CostEstimate(
            flops=flops, transcendentals=0, bytes_accessed=bytes_accessed
        ),
    )(phases, w_taps, bias)

    # Drop the junk column (j == Wo) introduced by the flattened-phase trick.
    return out_flat.reshape(N, C_out, Ho, Wp)[:, :, :, :Wo]


if __name__ == "__main__":
    key = jax.random.PRNGKey(0)
    k_x, k_w, k_g, k_b, k_m, k_v = jax.random.split(key, 6)

    N, C_in, C_out, H, W = 2, 4, 8, 16, 16
    eps = 1e-5

    x = jax.random.normal(k_x, (N, C_in, H, W), dtype=jnp.float32)
    w = jax.random.normal(k_w, (C_out, C_in, 3, 3), dtype=jnp.float32) * 0.1
    gamma = 1.0 + 0.1 * jax.random.normal(k_g, (C_out,), dtype=jnp.float32)
    beta = 0.1 * jax.random.normal(k_b, (C_out,), dtype=jnp.float32)
    running_mean = 0.1 * jax.random.normal(k_m, (C_out,), dtype=jnp.float32)
    running_var = jax.random.uniform(
        k_v, (C_out,), dtype=jnp.float32, minval=0.5, maxval=1.5
    )

    fn = jax.jit(downsample_layer)
    out = fn(x, w, gamma, beta, running_mean, running_var)
    out = jax.block_until_ready(out)

    # ---- Reference: lax conv (stride 2, pad 1) -> BN (inference) -> LeakyReLU(0.1)
    conv = jax.lax.conv_general_dilated(
        x, w,
        window_strides=(2, 2),
        padding=((1, 1), (1, 1)),
        dimension_numbers=("NCHW", "OIHW", "NCHW"),
        precision=jax.lax.Precision.HIGHEST,
    )
    scale = gamma / jnp.sqrt(running_var + eps)
    bn = (conv - running_mean[None, :, None, None]) * scale[None, :, None, None] \
        + beta[None, :, None, None]
    ref = jnp.where(bn > 0, bn, 0.1 * bn)

    assert out.shape == (N, C_out, H // 2, W // 2), out.shape
    # bf16 MXU inputs -> relaxed tolerances vs. the f32 HIGHEST reference.
    np.testing.assert_allclose(np.asarray(out), np.asarray(ref), rtol=2e-2, atol=3e-2)

    print("KERNEL_OK")
</pallas_src>

<mosaic_0001>
module attributes {stable_mosaic.version = 11 : i64} {
  func.func @_conv_bn_lrelu_kernel(%arg0: i32, %arg1: i32, %arg2: memref<1x4x4x90xbf16, #tpu.memory_space<vmem>>, %arg3: memref<9x8x4xbf16, #tpu.memory_space<vmem>>, %arg4: memref<8x1xf32, #tpu.memory_space<vmem>>, %arg5: memref<1x8x72xf32, #tpu.memory_space<vmem>>) attributes {dimension_semantics = [#tpu.dimension_semantics<parallel>, #tpu.dimension_semantics<parallel>], iteration_bounds = array<i64: 2, 1>, scalar_prefetch = 0 : i64, scratch_operands = 0 : i64, tpu.core_type = #tpu.core_type<tc>, window_params = [{transform_indices = @transform_0, window_bounds = array<i64: 1, 4, 4, 90>}, {transform_indices = @transform_1, window_bounds = array<i64: 9, 8, 4>}, {transform_indices = @transform_2, window_bounds = array<i64: 8, 1>}, {transform_indices = @transform_3, window_bounds = array<i64: 1, 8, 72>}]} {
    %cst = arith.constant 0.000000e+00 : f32
    %0 = vector.broadcast %cst : f32 to vector<8x72xf32>
    %c0 = arith.constant 0 : index
    %c0_0 = arith.constant 0 : index
    %c0_1 = arith.constant 0 : index
    %c0_2 = arith.constant 0 : index
    %1 = vector.load %arg2[%c0, %c0_0, %c0_1, %c0_2] : memref<1x4x4x90xbf16, #tpu.memory_space<vmem>>, vector<1x1x4x72xbf16>
    %2 = vector.shape_cast %1 : vector<1x1x4x72xbf16> to vector<4x72xbf16>
    %c0_3 = arith.constant 0 : index
    %c0_4 = arith.constant 0 : index
    %c0_5 = arith.constant 0 : index
    %3 = vector.load %arg3[%c0_3, %c0_4, %c0_5] : memref<9x8x4xbf16, #tpu.memory_space<vmem>>, vector<1x8x4xbf16>
    %4 = vector.shape_cast %3 : vector<1x8x4xbf16> to vector<8x4xbf16>
    %cst_6 = arith.constant dense<0.000000e+00> : vector<8x72xf32>
    %5 = tpu.matmul %4, %2, %cst_6 {dimension_numbers = #tpu.dot_dimension_numbers<[1], [0], [0], [1], [0, 0, 1, 1], [], []>} : vector<8x4xbf16>, vector<4x72xbf16>, vector<8x72xf32> -> vector<8x72xf32>
    %6 = arith.addf %0, %5 : vector<8x72xf32>
    %c0_7 = arith.constant 0 : index
    %c1 = arith.constant 1 : index
    %c0_8 = arith.constant 0 : index
    %c0_9 = arith.constant 0 : index
    %7 = vector.load %arg2[%c0_7, %c1, %c0_8, %c0_9] : memref<1x4x4x90xbf16, #tpu.memory_space<vmem>>, vector<1x1x4x72xbf16>
    %8 = vector.shape_cast %7 : vector<1x1x4x72xbf16> to vector<4x72xbf16>
    %c1_10 = arith.constant 1 : index
    %c0_11 = arith.constant 0 : index
    %c0_12 = arith.constant 0 : index
    %9 = vector.load %arg3[%c1_10, %c0_11, %c0_12] : memref<9x8x4xbf16, #tpu.memory_space<vmem>>, vector<1x8x4xbf16>
    %10 = vector.shape_cast %9 : vector<1x8x4xbf16> to vector<8x4xbf16>
    %cst_13 = arith.constant dense<0.000000e+00> : vector<8x72xf32>
    %11 = tpu.matmul %10, %8, %cst_13 {dimension_numbers = #tpu.dot_dimension_numbers<[1], [0], [0], [1], [0, 0, 1, 1], [], []>} : vector<8x4xbf16>, vector<4x72xbf16>, vector<8x72xf32> -> vector<8x72xf32>
    %12 = arith.addf %6, %11 : vector<8x72xf32>
    %c0_14 = arith.constant 0 : index
    %c0_15 = arith.constant 0 : index
    %c0_16 = arith.constant 0 : index
    %c1_17 = arith.constant 1 : index
    %13 = vector.load %arg2[%c0_14, %c0_15, %c0_16, %c1_17] : memref<1x4x4x90xbf16, #tpu.memory_space<vmem>>, vector<1x1x4x72xbf16>
    %14 = vector.shape_cast %13 : vector<1x1x4x72xbf16> to vector<4x72xbf16>
    %c2 = arith.constant 2 : index
    %c0_18 = arith.constant 0 : index
    %c0_19 = arith.constant 0 : index
    %15 = vector.load %arg3[%c2, %c0_18, %c0_19] : memref<9x8x4xbf16, #tpu.memory_space<vmem>>, vector<1x8x4xbf16>
    %16 = vector.shape_cast %15 : vector<1x8x4xbf16> to vector<8x4xbf16>
    %cst_20 = arith.constant dense<0.000000e+00> : vector<8x72xf32>
    %17 = tpu.matmul %16, %14, %cst_20 {dimension_numbers = #tpu.dot_dimension_numbers<[1], [0], [0], [1], [0, 0, 1, 1], [], []>} : vector<8x4xbf16>, vector<4x72xbf16>, vector<8x72xf32> -> vector<8x72xf32>
    %18 = arith.addf %12, %17 : vector<8x72xf32>
    %c0_21 = arith.constant 0 : index
    %c2_22 = arith.constant 2 : index
    %c0_23 = arith.constant 0 : index
    %c0_24 = arith.constant 0 : index
    %19 = vector.load %arg2[%c0_21, %c2_22, %c0_23, %c0_24] : memref<1x4x4x90xbf16, #tpu.memory_space<vmem>>, vector<1x1x4x72xbf16>
    %20 = vector.shape_cast %19 : vector<1x1x4x72xbf16> to vector<4x72xbf16>
    %c3 = arith.constant 3 : index
    %c0_25 = arith.constant 0 : index
    %c0_26 = arith.constant 0 : index
    %21 = vector.load %arg3[%c3, %c0_25, %c0_26] : memref<9x8x4xbf16, #tpu.memory_space<vmem>>, vector<1x8x4xbf16>
    %22 = vector.shape_cast %21 : vector<1x8x4xbf16> to vector<8x4xbf16>
    %cst_27 = arith.constant dense<0.000000e+00> : vector<8x72xf32>
    %23 = tpu.matmul %22, %20, %cst_27 {dimension_numbers = #tpu.dot_dimension_numbers<[1], [0], [0], [1], [0, 0, 1, 1], [], []>} : vector<8x4xbf16>, vector<4x72xbf16>, vector<8x72xf32> -> vector<8x72xf32>
    %24 = arith.addf %18, %23 : vector<8x72xf32>
    %c0_28 = arith.constant 0 : index
    %c3_29 = arith.constant 3 : index
    %c0_30 = arith.constant 0 : index
    %c0_31 = arith.constant 0 : index
    %25 = vector.load %arg2[%c0_28, %c3_29, %c0_30, %c0_31] : memref<1x4x4x90xbf16, #tpu.memory_space<vmem>>, vector<1x1x4x72xbf16>
    %26 = vector.shape_cast %25 : vector<1x1x4x72xbf16> to vector<4x72xbf16>
    %c4 = arith.constant 4 : index
    %c0_32 = arith.constant 0 : index
    %c0_33 = arith.constant 0 : index
    %27 = vector.load %arg3[%c4, %c0_32, %c0_33] : memref<9x8x4xbf16, #tpu.memory_space<vmem>>, vector<1x8x4xbf16>
    %28 = vector.shape_cast %27 : vector<1x8x4xbf16> to vector<8x4xbf16>
    %cst_34 = arith.constant dense<0.000000e+00> : vector<8x72xf32>
    %29 = tpu.matmul %28, %26, %cst_34 {dimension_numbers = #tpu.dot_dimension_numbers<[1], [0], [0], [1], [0, 0, 1, 1], [], []>} : vector<8x4xbf16>, vector<4x72xbf16>, vector<8x72xf32> -> vector<8x72xf32>
    %30 = arith.addf %24, %29 : vector<8x72xf32>
    %c0_35 = arith.constant 0 : index
    %c2_36 = arith.constant 2 : index
    %c0_37 = arith.constant 0 : index
    %c1_38 = arith.constant 1 : index
    %31 = vector.load %arg2[%c0_35, %c2_36, %c0_37, %c1_38] : memref<1x4x4x90xbf16, #tpu.memory_space<vmem>>, vector<1x1x4x72xbf16>
    %32 = vector.shape_cast %31 : vector<1x1x4x72xbf16> to vector<4x72xbf16>
    %c5 = arith.constant 5 : index
    %c0_39 = arith.constant 0 : index
    %c0_40 = arith.constant 0 : index
    %33 = vector.load %arg3[%c5, %c0_39, %c0_40] : memref<9x8x4xbf16, #tpu.memory_space<vmem>>, vector<1x8x4xbf16>
    %34 = vector.shape_cast %33 : vector<1x8x4xbf16> to vector<8x4xbf16>
    %cst_41 = arith.constant dense<0.000000e+00> : vector<8x72xf32>
    %35 = tpu.matmul %34, %32, %cst_41 {dimension_numbers = #tpu.dot_dimension_numbers<[1], [0], [0], [1], [0, 0, 1, 1], [], []>} : vector<8x4xbf16>, vector<4x72xbf16>, vector<8x72xf32> -> vector<8x72xf32>
    %36 = arith.addf %30, %35 : vector<8x72xf32>
    %c0_42 = arith.constant 0 : index
    %c0_43 = arith.constant 0 : index
    %c0_44 = arith.constant 0 : index
    %c9 = arith.constant 9 : index
    %37 = vector.load %arg2[%c0_42, %c0_43, %c0_44, %c9] : memref<1x4x4x90xbf16, #tpu.memory_space<vmem>>, vector<1x1x4x72xbf16>
    %38 = vector.shape_cast %37 : vector<1x1x4x72xbf16> to vector<4x72xbf16>
    %c6 = arith.constant 6 : index
    %c0_45 = arith.constant 0 : index
    %c0_46 = arith.constant 0 : index
    %39 = vector.load %arg3[%c6, %c0_45, %c0_46] : memref<9x8x4xbf16, #tpu.memory_space<vmem>>, vector<1x8x4xbf16>
    %40 = vector.shape_cast %39 : vector<1x8x4xbf16> to vector<8x4xbf16>
    %cst_47 = arith.constant dense<0.000000e+00> : vector<8x72xf32>
    %41 = tpu.matmul %40, %38, %cst_47 {dimension_numbers = #tpu.dot_dimension_numbers<[1], [0], [0], [1], [0, 0, 1, 1], [], []>} : vector<8x4xbf16>, vector<4x72xbf16>, vector<8x72xf32> -> vector<8x72xf32>
    %42 = arith.addf %36, %41 : vector<8x72xf32>
    %c0_48 = arith.constant 0 : index
    %c1_49 = arith.constant 1 : index
    %c0_50 = arith.constant 0 : index
    %c9_51 = arith.constant 9 : index
    %43 = vector.load %arg2[%c0_48, %c1_49, %c0_50, %c9_51] : memref<1x4x4x90xbf16, #tpu.memory_space<vmem>>, vector<1x1x4x72xbf16>
    %44 = vector.shape_cast %43 : vector<1x1x4x72xbf16> to vector<4x72xbf16>
    %c7 = arith.constant 7 : index
    %c0_52 = arith.constant 0 : index
    %c0_53 = arith.constant 0 : index
    %45 = vector.load %arg3[%c7, %c0_52, %c0_53] : memref<9x8x4xbf16, #tpu.memory_space<vmem>>, vector<1x8x4xbf16>
    %46 = vector.shape_cast %45 : vector<1x8x4xbf16> to vector<8x4xbf16>
    %cst_54 = arith.constant dense<0.000000e+00> : vector<8x72xf32>
    %47 = tpu.matmul %46, %44, %cst_54 {dimension_numbers = #tpu.dot_dimension_numbers<[1], [0], [0], [1], [0, 0, 1, 1], [], []>} : vector<8x4xbf16>, vector<4x72xbf16>, vector<8x72xf32> -> vector<8x72xf32>
    %48 = arith.addf %42, %47 : vector<8x72xf32>
    %c0_55 = arith.constant 0 : index
    %c0_56 = arith.constant 0 : index
    %c0_57 = arith.constant 0 : index
    %c10 = arith.constant 10 : index
    %49 = vector.load %arg2[%c0_55, %c0_56, %c0_57, %c10] : memref<1x4x4x90xbf16, #tpu.memory_space<vmem>>, vector<1x1x4x72xbf16>
    %50 = vector.shape_cast %49 : vector<1x1x4x72xbf16> to vector<4x72xbf16>
    %c8 = arith.constant 8 : index
    %c0_58 = arith.constant 0 : index
    %c0_59 = arith.constant 0 : index
    %51 = vector.load %arg3[%c8, %c0_58, %c0_59] : memref<9x8x4xbf16, #tpu.memory_space<vmem>>, vector<1x8x4xbf16>
    %52 = vector.shape_cast %51 : vector<1x8x4xbf16> to vector<8x4xbf16>
    %cst_60 = arith.constant dense<0.000000e+00> : vector<8x72xf32>
    %53 = tpu.matmul %52, %50, %cst_60 {dimension_numbers = #tpu.dot_dimension_numbers<[1], [0], [0], [1], [0, 0, 1, 1], [], []>} : vector<8x4xbf16>, vector<4x72xbf16>, vector<8x72xf32> -> vector<8x72xf32>
    %54 = arith.addf %48, %53 : vector<8x72xf32>
    %c0_61 = arith.constant 0 : index
    %c0_62 = arith.constant 0 : index
    %55 = vector.load %arg4[%c0_61, %c0_62] : memref<8x1xf32, #tpu.memory_space<vmem>>, vector<8x1xf32>
    %56 = vector.broadcast %55 : vector<8x1xf32> to vector<8x72xf32>
    %57 = arith.addf %54, %56 : vector<8x72xf32>
    %cst_63 = arith.constant 0.000000e+00 : f32
    %58 = vector.broadcast %cst_63 : f32 to vector<8x72xf32>
    %59 = arith.cmpf ogt, %57, %58 : vector<8x72xf32>
    %cst_64 = arith.constant 1.000000e-01 : f32
    %60 = vector.broadcast %cst_64 : f32 to vector<8x72xf32>
    %61 = arith.mulf %60, %57 : vector<8x72xf32>
    %62 = arith.select %59, %57, %61 : vector<8x72xi1>, vector<8x72xf32>
    %c0_65 = arith.constant 0 : index
    %c0_66 = arith.constant 0 : index
    %c0_67 = arith.constant 0 : index
    %63 = vector.load %arg5[%c0_65, %c0_66, %c0_67] : memref<1x8x72xf32, #tpu.memory_space<vmem>>, vector<1x8x72xf32>
    %64 = vector.shape_cast %63 : vector<1x8x72xf32> to vector<8x72xf32>
    %65 = vector.shape_cast %62 : vector<8x72xf32> to vector<1x8x72xf32>
    tpu.vector_store %arg5[%c0_65, %c0_66, %c0_67], %65 {strides = array<i32>} : memref<1x8x72xf32, #tpu.memory_space<vmem>>, vector<1x8x72xf32>,
    return
  }
  func.func @transform_0(%arg0: i32, %arg1: i32) -> (i32, i32, i32, i32) {
    %c0_i32 = arith.constant 0 : i32
    %c0_i32_0 = arith.constant 0 : i32
    %c0_i32_1 = arith.constant 0 : i32
    %c0_i32_2 = arith.constant 0 : i32
    return %arg0, %c0_i32, %c0_i32_0, %c0_i32_1 : i32, i32, i32, i32
  }
  func.func @transform_1(%arg0: i32, %arg1: i32) -> (i32, i32, i32) {
    %c0_i32 = arith.constant 0 : i32
    %c0_i32_0 = arith.constant 0 : i32
    %c0_i32_1 = arith.constant 0 : i32
    return %c0_i32, %arg1, %c0_i32_0 : i32, i32, i32
  }
  func.func @transform_2(%arg0: i32, %arg1: i32) -> (i32, i32) {
    %c0_i32 = arith.constant 0 : i32
    %c0_i32_0 = arith.constant 0 : i32
    return %arg1, %c0_i32 : i32, i32
  }
  func.func @transform_3(%arg0: i32, %arg1: i32) -> (i32, i32, i32) {
    %c0_i32 = arith.constant 0 : i32
    %c0_i32_0 = arith.constant 0 : i32
    return %arg0, %arg1, %c0_i32 : i32, i32, i32
  }
}

</mosaic_0001>

<bundles_post_ra>
// kernel: downsample_layer.1
= control target key start
LH: loop header
LB: loop body
LE: loop exit
PB: predicated region body
PF: predicated region fallthrough
CT: control target
= control target key end

     0   :  { %s1031_s12 = smov 0   ;;  %s1033_s13 = smov 0   ;;  %s1154_s0 = inlined_call_operand.vmem [shape: bf16[2,4,4,90], index: 0, kind: input, shape index: {}]   ;;  %s1155_s1 = inlined_call_operand.vmem [shape: bf16[9,8,4], index: 1, kind: input, shape index: {}]   ;;  %s1156_s2 = inlined_call_operand.vmem [shape: f32[8,1], index: 2, kind: input, shape index: {}]   ;;  %s1157_s3 = inlined_call_operand.vmem [shape: f32[2,8,72], index: 3, kind: output, shape index: {}]  }
   0x1   :  { %s1035_s14 = smov 0  }
   0x2 LB: > { %s25_s15 = sadd.s32 1, %s998_s13  ;;  %p844_p0 = scmp.ge.s32.totalorder %s1002_s14, 1  ;;  %s1002_s14 = sphi %s1035_s14, %s13_s14   ;;  %s998_s13 = sphi %s1033_s13, %s1159_s13   ;;  %s994_s12 = sphi %s1031_s12, %s1158_s12  }
   0x3   : > { %p27_p1 = scmp.ge.s32.totalorder %s25_s15, 2  ;;  %p169_p2 = scmp.lt.s32.totalorder %s1002_s14, 3 }
   0x5   : > { %s1161_s15 = smov (%p27_p1, %s25_s15), 0  ;;  %p170_p3 = pnand %p844_p0, %p169_p2 }
   0x6   : > { %p203_p4 = scmp.lt.s32.totalorder (!%p170_p3), %s994_s12, 1  ;;  %s1007_s20 = smov (!%p170_p3), 119  }
   0x7   : > { %173 = sbr.rel (%p170_p3) target bundleno = 365 (0x16d), region = 32  ;;  %s1008_s23 = smov (!%p170_p3), 127  }
   0x8   : > { %s1009_s26 = smov (!%p170_p3), 118  }
   0xc   : > { %v330_v0 = vlaneseq  ;;  %v1004_v1 = vmov 1983009808   ;;  %v1005_v3 = vmov 0.0   ;;  %s1163_s12 = smov (!%p203_p4, %s994_s12), 1  ;;  %vm1006_vm0 = vmmov 0   ;;  %v724_v20 = vld [vmem:[%s1156_s2] sm:$0xff] }
   0xd   : > { %v328_v2 = vunpack.c.l.s4 %v1004_v1  ;;  %893 = vmatprep.subr.bf16.mxu0 %v1005_v3  ;;  %899 = vmatprep.subr.bf16.mxu1 %v1005_v3  ;;  %s874_s16 = sshll.u32 %s1163_s12, 3  ;;  %vm234_vm1 = vcmask 1041408   ;;  %v849_v14 = vld [vmem:[%s1155_s1 + $0x4] sm:$0xf]  ;;  %vm230_vm2 = vcmask 31744   ;;  %v1010_v21 = vmov 0  }
   0xe   : > { %v331_v4 = vshrl.u32 %v330_v0, 7  ;;  %895 = vmatprep.mubr.msk.bf16.mxu0 %vm1006_vm0, %v1005_v3  ;;  %901 = vmatprep.mubr.msk.bf16.mxu1 %vm1006_vm0, %v1005_v3  ;;  %s1063_s19 = scalar_lea.vmem %s1154_s0, %s874_s16  ;;  %v225_v17 = vld [vmem:[%s1155_s1] sm:$0xf]  ;;  %v855_v19 = vld [vmem:[%s1155_s1 + $0xc] sm:$0xf]  ;;  %vm734_vm3 = vcmask 588800  }
   0xf   : > { %v329_v5 = vunpack.c.0.s8 %v328_v2  ;;  %v224_v7 = vld [vmem:[%s1063_s19] sm:$0x3]  ;;  %v854_v8 = vld [vmem:[%s1063_s19 + $0x4] sm:$0x3]  ;;  %v848_v9 = vld [vmem:[%s1063_s19 + $0x2] sm:$0x3]  ;;  %978 = vset.pattern.permute.xlu1 %v1010_v21  ;;  %979 = vset.pattern.permute.xlu0 %v1010_v21 }
  0x10   : > { %v863_v11 = vld.sshfl [vmem:[%s1063_s19] sm:$0x3 pattern:$0x76325410]  ;;  %v236_v12 = vsel %vm234_vm1, %v848_v9, 0  ;;  %v282_v13 = vsel %vm234_vm1, %v224_v7, 0 }
  0x11   : > { %v332_v6 = vsub.s32 %v329_v5, %v331_v4  ;;  %555 = vrot.lane.b32.xlu1 %v863_v11, %s1007_s20  ;;  %894 = vmatpush3.bf16.msra.mxu0 %v236_v12  ;;  %v867_v16 = vld.sshfl [vmem:[%s1063_s19 + $0x2] sm:$0x3 pattern:$0x76325410]  ;;  %v391_v18 = vsel %vm234_vm1, %v854_v8, 0 }
  0x12   : > { %900 = vmatpush3.bf16.msra.mxu1 %v282_v13  ;;  %905 = vmatprep.subr.bf16.mxu0 %v1005_v3  ;;  %v857_v24 = vld [vmem:[%s1063_s19 + $0x6] sm:$0x3]  ;;  %v852_v26 = vld [vmem:[%s1155_s1 + $0x8] sm:$0xf]  ;;  %v860_v31 = vld [vmem:[%s1155_s1 + $0x14] sm:$0xf] }
  0x13   : > { %v333_v10 = vrot.slane %v224_v7, %v332_v6  ;;  %v494_v15 = vrot.slane %v854_v8, %v332_v6  ;;  %911 = vmatprep.subr.bf16.mxu1 %v1005_v3  ;;  %v442_v27 = vsel %vm234_vm1, %v857_v24, 0  ;;  %v858_v33 = vld [vmem:[%s1155_s1 + $0x10] sm:$0xf]  ;;  %v866_v35 = vld [vmem:[%s1155_s1 + $0x1c] sm:$0xf] }
  0x14   : > { %896 = vmatmul.mubr.msk.bf16.vlgmr.msra.gmra.mxu0 %vm230_vm2, %v849_v14  ;;  %v862_v37 = vld [vmem:[%s1155_s1 + $0x18] sm:$0xf]  ;;  %v869_v39 = vld [vmem:[%s1155_s1 + $0x20] sm:$0xf] }
  0x15   : > { %334 = vrot.lane.b32.xlu0 %v333_v10, %s1008_s23  ;;  %615 = vrot.lane.b32.xlu1 %v867_v16, %s1007_s20 }
  0x16   : > { %902 = vmatmul.mubr.msk.bf16.vlgmr.msra.gmra.mxu1 %vm230_vm2, %v225_v17  ;;  %907 = vmatprep.mubr.msk.bf16.mxu0 %vm1006_vm0, %v1005_v3 }
  0x17   : > { %912 = vmatpush3.bf16.msra.mxu1 %v391_v18  ;;  %913 = vmatprep.mubr.msk.bf16.mxu1 %vm1006_vm0, %v1005_v3 }
  0x18   : > { %923 = vmatprep.subr.bf16.mxu1 %v1005_v3 }
  0x19   : > { %495 = vrot.lane.b32.xlu0 %v494_v15, %s1008_s23  ;;  %727 = vperm.xlu1 %978, %v724_v20   ;;  %s222_s23 = scalar_lea.vmem %s1157_s3, %s874_s16 }
  0x1d   : > { %675 = vrot.lane.b32.xlu0 %v863_v11, %s1009_s26 }
  0x1e   : > { %914 = vmatmul.mubr.msk.bf16.vlgmr.msra.gmra.mxu1 %vm230_vm2, %v855_v19 }
  0x1f   : > { %925 = vmatprep.mubr.msk.bf16.mxu1 %vm1006_vm0, %v1005_v3 }
  0x83   : > { %v556_v22 = vpop.permute.xlu1 %555 }
  0x84   : > { %v561_v34 = vsel %vm234_vm1, %v556_v22, 0 }
  0x87   : > { %v335_v23 = vpop.permute.xlu0 %334  ;;  %v616_v30 = vpop.permute.xlu1 %615 }
  0x88   : > { %v340_v25 = vsel %vm234_vm1, %v335_v23, 0  ;;  %v621_v32 = vsel %vm234_vm1, %v616_v30, 0 }
  0x89   : > { %906 = vmatpush3.bf16.msra.mxu0 %v340_v25 }
  0x8a   : > { %917 = vmatprep.subr.bf16.mxu0 %v1005_v3 }
  0x8b   : > { %v496_v28 = vpop.permute.xlu0 %495 }
  0x8c   : > { %908 = vmatmul.mubr.msk.bf16.vlgmr.msra.gmra.mxu0 %vm230_vm2, %v852_v26  ;;  %v501_v29 = vsel %vm234_vm1, %v496_v28, 0 }
  0x8d   : > { %918 = vmatpush3.bf16.msra.mxu0 %v442_v27  ;;  %919 = vmatprep.mubr.msk.bf16.mxu0 %vm1006_vm0, %v1005_v3 }
  0x8e   : > { %924 = vmatpush3.bf16.msra.mxu1 %v501_v29  ;;  %929 = vmatprep.subr.bf16.mxu0 %v1005_v3 }
  0x8f   : > { %935 = vmatprep.subr.bf16.mxu1 %v1005_v3  ;;  %v676_v36 = vpop.permute.xlu0 %675 }
  0x90   : > { %v681_v38 = vsel %vm234_vm1, %v676_v36, 0 }
  0x91   : > { %926 = vmatmul.mubr.msk.bf16.vlgmr.msra.gmra.mxu1 %vm230_vm2, %v860_v31 }
  0x92   : > { %936 = vmatpush3.bf16.msra.mxu1 %v621_v32  ;;  %937 = vmatprep.mubr.msk.bf16.mxu1 %vm1006_vm0, %v1005_v3 }
  0x94   : > { %920 = vmatmul.mubr.msk.bf16.vlgmr.msra.gmra.mxu0 %vm230_vm2, %v858_v33  ;;  %v728_v16 = vpop.permute.xlu1 %727 }
  0x95   : > { %930 = vmatpush3.bf16.msra.mxu0 %v561_v34  ;;  %931 = vmatprep.mubr.msk.bf16.mxu0 %vm1006_vm0, %v1005_v3 }
  0x96   : > { %941 = vmatprep.subr.bf16.mxu0 %v1005_v3 }
  0x99   : > { %938 = vmatmul.mubr.msk.bf16.vlgmr.msra.gmra.mxu1 %vm230_vm2, %v866_v35 }
  0x9c   : > { %932 = vmatmul.mubr.msk.bf16.vlgmr.msra.gmra.mxu0 %vm230_vm2, %v862_v37 }
  0x9d   : > { %942 = vmatpush3.bf16.msra.mxu0 %v681_v38  ;;  %943 = vmatprep.mubr.msk.bf16.mxu0 %vm1006_vm0, %v1005_v3 }
  0xa4   : > { %944 = vmatmul.mubr.msk.bf16.vlgmr.msra.gmra.mxu0 %vm230_vm2, %v869_v39 }
  0xd4   : > { %v272_v40 = vpop.f32.mrf.mxu0 }
  0xd6   : > { %v318_v41 = vpop.f32.mrf.mxu1  ;;  %v897_v42 = vpop.f32.mrf.mxu0 }
  0xd7   : > { %v319_v43 = vadd.f32 %v318_v41, %v272_v40 }
  0xd8   : > { %v903_v44 = vpop.f32.mrf.mxu1  ;;  %v275_v45 = vpop.f32.mrf.mxu0 }
  0xda   : > { %v321_v46 = vpop.f32.mrf.mxu1  ;;  %v898_v47 = vpop.f32.mrf.mxu0 }
  0xdc   : > { %v904_v48 = vpop.f32.mrf.mxu1 }
  0xde   : > { %v427_v49 = vpop.f32.mrf.mxu1 }
  0xe0   : > { %v915_v50 = vpop.f32.mrf.mxu1 }
  0xe2   : > { %v430_v51 = vpop.f32.mrf.mxu1 }
  0xe4   : > { %v916_v52 = vpop.f32.mrf.mxu1 }
 0x14c   : > { %v376_v53 = vpop.f32.mrf.mxu0 }
 0x14d   : > { %v382_v58 = vadd.f32 %v376_v53, %v319_v43 }
 0x14e   : > { %v909_v54 = vpop.f32.mrf.mxu0 }
 0x14f   : > { %v433_v63 = vadd.f32 %v427_v49, %v382_v58 }
 0x150   : > { %v379_v55 = vpop.f32.mrf.mxu0 }
 0x151   : > { %v537_v56 = vpop.f32.mrf.mxu1 }
 0x152   : > { %v910_v57 = vpop.f32.mrf.mxu0 }
 0x153   : > { %v927_v59 = vpop.f32.mrf.mxu1 }
 0x154   : > { %v478_v60 = vpop.f32.mrf.mxu0 }
 0x155   : > { %v540_v61 = vpop.f32.mrf.mxu1  ;;  %v484_v2 = vadd.f32 %v478_v60, %v433_v63 }
 0x156   : > { %v921_v62 = vpop.f32.mrf.mxu0 }
 0x157   : > { %v928_v0 = vpop.f32.mrf.mxu1  ;;  %v543_v7 = vadd.f32 %v537_v56, %v484_v2 }
 0x158   : > { %v481_v1 = vpop.f32.mrf.mxu0 }
 0x159   : > { %v657_v3 = vpop.f32.mrf.mxu1 }
 0x15a   : > { %v922_v4 = vpop.f32.mrf.mxu0 }
 0x15b   : > { %v939_v5 = vpop.f32.mrf.mxu1 }
 0x15c   : > { %v597_v6 = vpop.f32.mrf.mxu0 }
 0x15d   : > { %v660_v8 = vpop.f32.mrf.mxu1  ;;  %v603_v10 = vadd.f32 %v597_v6, %v543_v7 }
 0x15e   : > { %v933_v9 = vpop.f32.mrf.mxu0 }
 0x15f   : > { %v940_v11 = vpop.f32.mrf.mxu1  ;;  %v663_v14 = vadd.f32 %v657_v3, %v603_v10 }
 0x160   : > { %v600_v12 = vpop.f32.mrf.mxu0 }
 0x162   : > { %v934_v13 = vpop.f32.mrf.mxu0 }
 0x164   : > { %v717_v15 = vpop.f32.mrf.mxu0 }
 0x165   : > { %v723_v17 = vadd.f32 %v717_v15, %v663_v14 }
 0x166   : > { %v945_v18 = vpop.f32.mrf.mxu0 }
 0x167   : > { %v730_v19 = vadd.f32 %v728_v16, %v723_v17 }
 0x168   : > { %v720_v20 = vpop.f32.mrf.mxu0 }
 0x169   : > { %vm731_vm4 = vcmp.gt.f32.partialorder %v730_v19, 0.0  ;;  %v732_v21 = vmul.f32 0.1, %v730_v19 }
 0x16a   : > { %v946_v22 = vpop.f32.mrf.mxu0 }
 0x16b   : > { %v733_v23 = vsel %vm731_vm4, %v730_v19, %v732_v21 }
 0x16c   : > { %735 = vst.msk [vmem:[%s222_s23] sm:$0xff] %vm734_vm3, %v733_v23 }
 0x16d PF: > { %s13_s14 = sadd.s32 1, %s1002_s14   ;;  %s1158_s12 = smov %s998_s13 }
 0x16e   : > { %p10_p5 = scmp.ge.s32.totalorder %s13_s14, 4   ;;  %s1159_s13 = smov %s1161_s15 }
 0x170   :  { %12 = sbr.rel (!%p10_p5) target bundleno = 2 (0x2), region = 79 }

</bundles_post_ra>
